<compile_context>
chip_gen: v7x
topology: tpu7x:2x2x1
jax: 0.10.0
libtpu: 0.0.40
codegen_flags: <defaults>
</compile_context>

<pallas_src>
import math
from functools import partial

import jax
import jax.numpy as jnp
from jax import lax
from jax.experimental import pallas as pl
from jax.experimental.pallas import tpu as pltpu

_LOG2 = math.log(2.0)
_GAUSS_EPS = 1e-6
_OUT_LANES = 128

# Packed (24, B) operand layout.
_GRP = 8                                    # size of pred / true row groups
# rows 0..5 of each group (6,7 are zero padding):
_R_MOS, _R_TRIP_AP, _R_TRIP_AN, _R_SNR, _R_STOI, _R_MCD = 0, 1, 2, 3, 4, 5
# aux rows:
_R_MOS_MASK, _R_CONTR_MASK, _R_VAR, _R_LABEL = 16, 17, 18, 19
_N_ROWS = 24

# Deterministic, synthetic loss coefficients (the module's "parameters").
BETAS = {
    "mos_final": 1.0,
    "noise_label": 0.5,
    "consist_mos": 0.3,
    "contrast_mos": 0.2,
    "var_mos_final": 0.1,
    "snr": 0.05,
    "stoi": 0.05,
    "mcd": 0.05,
}
TRIPLET_MARGIN = 0.1
CONTRAST_MARGIN = 0.2
CLIP_TAU = 0.0


def _softplus(x):
    # numerically stable softplus
    return jnp.maximum(x, 0.0) + jnp.log(1.0 + jnp.exp(-jnp.abs(x)))


def _logcosh(x):
    return x + _softplus(-2.0 * x) - _LOG2


def _combined_loss_kernel(betas, triplet_margin, contrast_margin, clip_tau,
                          n_clean_ref, rows_ref, cols_ref, logits_ref, out_ref):
    B = rows_ref.shape[1]
    C = logits_ref.shape[0]

    def aux(k):                                   # (1, B) static sublane slice
        return rows_ref[k:k + 1, :]

    mos_mask = aux(_R_MOS_MASK)                   # (1, B) in {0, 1}
    contr_mask = aux(_R_CONTR_MASK)               # (1, B) in {0, 1}
    var_row = aux(_R_VAR)                         # (1, B)
    label_row = aux(_R_LABEL)                     # (1, B) float class ids

    # ---- fused log-cosh block: ONE subtract, ONE logcosh, ONE lane reduce ----
    diff8 = rows_ref[0:_GRP, :] - rows_ref[_GRP:2 * _GRP, :]     # (8, B)
    l8 = _logcosh(diff8)                                         # (8, B)
    if clip_tau > 0.0:
        # clip applies only to rows that go through `final_mos` (mos + triplet)
        sub = lax.broadcasted_iota(jnp.int32, (_GRP, B), 0)
        keep = jnp.logical_or(sub > _R_TRIP_AN, jnp.abs(diff8) > clip_tau)
        l8 = jnp.where(keep, l8, 0.0)
    # Mask the MOS row post-logcosh (logcosh(0)==0, so for a {0,1} mask this is
    # identical to masking the inputs before the diff, as PyTorch does).
    sub0 = lax.broadcasted_iota(jnp.int32, (_GRP, B), 0) == _R_MOS
    l8 = jnp.where(sub0, l8 * mos_mask, l8)
    means8 = jnp.mean(l8, axis=1, keepdims=True)                 # (8, 1)

    mos_loss = means8[_R_MOS:_R_MOS + 1, 0:1]                    # (1, 1)
    d_ap = means8[_R_TRIP_AP:_R_TRIP_AP + 1, 0:1]
    d_an = means8[_R_TRIP_AN:_R_TRIP_AN + 1, 0:1]
    trip_loss = jnp.maximum(d_ap - d_an + triplet_margin, 0.0)
    snr_loss = means8[_R_SNR:_R_SNR + 1, 0:1]
    stoi_loss = means8[_R_STOI:_R_STOI + 1, 0:1]
    mcd_loss = means8[_R_MCD:_R_MCD + 1, 0:1]

    # ---- noise-label cross entropy (logits transposed to (C, B)) -------------
    logits = logits_ref[...]                                     # (C, B)
    m = jnp.max(logits, axis=0, keepdims=True)                   # (1, B)
    lse = m + jnp.log(jnp.sum(jnp.exp(logits - m), axis=0, keepdims=True))
    labels = label_row.astype(jnp.int32)                         # (1, B)
    onehot = (lax.broadcasted_iota(jnp.int32, (C, B), 0) == labels
              ).astype(jnp.float32)
    picked = jnp.sum(logits * onehot, axis=0, keepdims=True)     # (1, B)
    ce_loss = jnp.mean(lse - picked)

    # ---- contrastive MOS loss: single broadcasted (B, B) op ------------------
    mos_diff = diff8[_R_MOS:_R_MOS + 1, :]                       # (1, B) unmasked
    e_col = (cols_ref[:, 0:1] - cols_ref[:, 1:2]) * cols_ref[:, 2:3]   # (B, 1)
    e_row = mos_diff * contr_mask                                # (1, B)
    pair = jnp.maximum(jnp.abs(e_col - e_row) - contrast_margin, 0.0)  # (B, B)
    contr_loss = jnp.sum(pair) * (0.5 / float(B * B))

    # ---- Gaussian NLL on the first n_clean items ------------------------------
    n_clean = n_clean_ref[0]
    clean_mask = (lax.broadcasted_iota(jnp.int32, (1, B), 1) < n_clean
                  ).astype(jnp.float32)
    var = jnp.maximum(var_row, _GAUSS_EPS)
    g = 0.5 * (jnp.log(var) + mos_diff * mos_diff / var)
    denom = jnp.maximum(n_clean.astype(jnp.float32), 1.0)   # guard n_clean == 0
    gauss_loss = jnp.sum(g * clean_mask) / denom

    # ---- weighted sum ---------------------------------------------------------
    total = (betas["mos_final"] * mos_loss
             + betas["noise_label"] * ce_loss
             + betas["consist_mos"] * trip_loss
             + betas["snr"] * snr_loss
             + betas["stoi"] * stoi_loss
             + betas["mcd"] * mcd_loss
             + betas["contrast_mos"] * contr_loss
             + betas["var_mos_final"] * gauss_loss)

    vals = [total, mos_loss, ce_loss, trip_loss, snr_loss, stoi_loss,
            mcd_loss, contr_loss, gauss_loss]
    lane = lax.broadcasted_iota(jnp.int32, (1, _OUT_LANES), 1)
    terms = [jnp.where(lane == k, v, 0.0) for k, v in enumerate(vals)]
    # Balanced-tree sum: avoids one long serial VPU dependency chain.
    while len(terms) > 1:
        terms = [terms[i] + terms[i + 1] if i + 1 < len(terms) else terms[i]
                 for i in range(0, len(terms), 2)]
    out_ref[...] = terms[0]


def combined_final_loss(n_clean, mos_mask, contrast_mask, mos_pred, mos_gtrue,
                        pred_var_mos, regression_metrics, pred_noise_label,
                        true_noise_label, triplet_metrics,
                        betas=BETAS, triplet_loss_margin=TRIPLET_MARGIN,
                        contrast_margin=CONTRAST_MARGIN, clip_tau=CLIP_TAU):
    B = mos_pred.shape[0]
    f32 = jnp.float32

    a, p, n = triplet_metrics[0]
    (snr_p, snr_t), (stoi_p, stoi_t), (mcd_p, mcd_t) = regression_metrics

    zero = jnp.zeros((B,), f32)

    # One packed (24, B) operand -> one DMA (rows addressed by static index).
    rows = jnp.stack([
        # pred group (rows 0..7)
        jnp.asarray(mos_pred, f32),
        jnp.asarray(a, f32), jnp.asarray(a, f32),
        jnp.asarray(snr_p, f32), jnp.asarray(stoi_p, f32), jnp.asarray(mcd_p, f32),
        zero, zero,
        # true group (rows 8..15), aligned with the pred group
        jnp.asarray(mos_gtrue, f32),
        jnp.asarray(p, f32), jnp.asarray(n, f32),
        jnp.asarray(snr_t, f32), jnp.asarray(stoi_t, f32), jnp.asarray(mcd_t, f32),
        zero, zero,
        # aux rows (16..23)
        jnp.asarray(mos_mask, f32), jnp.asarray(contrast_mask, f32),
        jnp.asarray(pred_var_mos, f32),
        jnp.asarray(true_noise_label, f32).reshape(-1),
        zero, zero, zero, zero,
    ], axis=0)                                      # (24, B)
    assert rows.shape == (_N_ROWS, B)

    # Column-layout copy of the contrastive inputs (for the (B,1)-(1,B) bcast).
    cols = jnp.stack([jnp.asarray(mos_pred, f32),
                      jnp.asarray(mos_gtrue, f32),
                      jnp.asarray(contrast_mask, f32),
                      zero], axis=1)                # (B, 4)

    logits_cb = jnp.asarray(pred_noise_label, f32).T            # (C, B)
    n_clean_arr = jnp.asarray(n_clean, jnp.int32).reshape((1,))

    kernel = partial(_combined_loss_kernel, betas, triplet_loss_margin,
                     contrast_margin, clip_tau)

    vmem = pl.BlockSpec(memory_space=pltpu.MemorySpace.VMEM)
    smem = pl.BlockSpec(memory_space=pltpu.MemorySpace.SMEM)

    out = pl.pallas_call(
        kernel,
        out_shape=jax.ShapeDtypeStruct((1, _OUT_LANES), jnp.float32),
        in_specs=[smem, vmem, vmem, vmem],
        out_specs=vmem,
    )(n_clean_arr, rows, cols, logits_cb)

    loss = out[0, 0]
    stats = {
        "mos": out[0, 1],
        "noise_label": out[0, 2],
        "consist_mos": out[0, 3],
        "snr": out[0, 4],
        "stoi": out[0, 5],
        "mcd": out[0, 6],
        "contrast_mos": out[0, 7],
        "gauss_loss": out[0, 8],
    }
    return loss, stats


def _reference_loss(n_clean, mos_mask, contrast_mask, mos_pred, mos_gtrue,
                    pred_var_mos, regression_metrics, pred_noise_label,
                    true_noise_label, triplet_metrics, betas):
    """Pure-JAX mirror of the PyTorch forward (sanity check only)."""
    def logcosh_mean(pp, tt):
        x = pp - tt
        return jnp.mean(x + jax.nn.softplus(-2.0 * x) - _LOG2)

    mm = mos_mask.astype(jnp.float32)
    cm = contrast_mask.astype(jnp.float32)
    mos = logcosh_mean(mos_pred * mm, mos_gtrue * mm)

    logp = jax.nn.log_softmax(pred_noise_label, axis=-1)
    ce = -jnp.mean(jnp.take_along_axis(logp, true_noise_label[:, None], axis=1))

    a, p_, n_ = triplet_metrics[0]
    trip = jnp.maximum(
        logcosh_mean(a, p_) - logcosh_mean(a, n_) + TRIPLET_MARGIN, 0.0)

    regs = [logcosh_mean(pp, tt) for pp, tt in regression_metrics]

    e = mos_pred * cm - mos_gtrue * cm
    diff = jnp.abs(e[:, None] - e[None, :]) - CONTRAST_MARGIN
    contr = jnp.mean(jnp.maximum(diff, 0.0)) / 2.0

    var = jnp.maximum(pred_var_mos[:n_clean], _GAUSS_EPS)
    gauss = jnp.mean(
        0.5 * (jnp.log(var) + (mos_pred[:n_clean] - mos_gtrue[:n_clean]) ** 2 / var))

    return (betas["mos_final"] * mos + betas["noise_label"] * ce
            + betas["consist_mos"] * trip + betas["snr"] * regs[0]
            + betas["stoi"] * regs[1] + betas["mcd"] * regs[2]
            + betas["contrast_mos"] * contr + betas["var_mos_final"] * gauss)


if __name__ == "__main__":
    B, C = 8, 4
    n_clean = 5
    keys = jax.random.split(jax.random.PRNGKey(0), 16)

    mos_pred = jax.random.normal(keys[0], (B,), jnp.float32) + 3.0
    mos_gtrue = jax.random.normal(keys[1], (B,), jnp.float32) + 3.0
    mos_mask = jax.random.bernoulli(keys[2], 0.75, (B,))
    contrast_mask = jax.random.bernoulli(keys[3], 0.75, (B,))
    pred_var_mos = jax.random.uniform(keys[4], (B,), jnp.float32, 0.1, 1.0)
    pred_noise_label = jax.random.normal(keys[5], (B, C), jnp.float32)
    true_noise_label = jax.random.randint(keys[6], (B,), 0, C)
    triplet_metrics = [(jax.random.normal(keys[7], (B,), jnp.float32),
                        jax.random.normal(keys[8], (B,), jnp.float32),
                        jax.random.normal(keys[9], (B,), jnp.float32))]
    regression_metrics = [
        (jax.random.normal(keys[10 + 2 * i], (B,), jnp.float32),
         jax.random.normal(keys[11 + 2 * i], (B,), jnp.float32))
        for i in range(3)
    ]

    loss, stats = combined_final_loss(
        n_clean, mos_mask, contrast_mask, mos_pred, mos_gtrue, pred_var_mos,
        regression_metrics, pred_noise_label, true_noise_label, triplet_metrics)
    jax.block_until_ready(loss)

    ref = _reference_loss(
        n_clean, mos_mask, contrast_mask, mos_pred, mos_gtrue, pred_var_mos,
        regression_metrics, pred_noise_label, true_noise_label,
        triplet_metrics, BETAS)
    assert abs(float(loss) - float(ref)) < 1e-3 * max(1.0, abs(float(ref))), (
        float(loss), float(ref))

    print("KERNEL_OK")
</pallas_src>

<mosaic_0001>
module attributes {stable_mosaic.version = 11 : i64} {
  func.func @_combined_loss_kernel(%arg0: memref<1xi32, #tpu.memory_space<smem>>, %arg1: memref<24x8xf32, #tpu.memory_space<vmem>>, %arg2: memref<8x4xf32, #tpu.memory_space<vmem>>, %arg3: memref<4x8xf32, #tpu.memory_space<vmem>>, %arg4: memref<1x128xf32, #tpu.memory_space<vmem>>) attributes {dimension_semantics = [], scalar_prefetch = 0 : i64, scratch_operands = 0 : i64, tpu.core_type = #tpu.core_type<tc>} {
    %c16 = arith.constant 16 : index
    %c0 = arith.constant 0 : index
    %0 = vector.load %arg1[%c16, %c0] : memref<24x8xf32, #tpu.memory_space<vmem>>, vector<1x8xf32>
    %c17 = arith.constant 17 : index
    %c0_0 = arith.constant 0 : index
    %1 = vector.load %arg1[%c17, %c0_0] : memref<24x8xf32, #tpu.memory_space<vmem>>, vector<1x8xf32>
    %c18 = arith.constant 18 : index
    %c0_1 = arith.constant 0 : index
    %2 = vector.load %arg1[%c18, %c0_1] : memref<24x8xf32, #tpu.memory_space<vmem>>, vector<1x8xf32>
    %c19 = arith.constant 19 : index
    %c0_2 = arith.constant 0 : index
    %3 = vector.load %arg1[%c19, %c0_2] : memref<24x8xf32, #tpu.memory_space<vmem>>, vector<1x8xf32>
    %c0_3 = arith.constant 0 : index
    %c0_4 = arith.constant 0 : index
    %4 = vector.load %arg1[%c0_3, %c0_4] : memref<24x8xf32, #tpu.memory_space<vmem>>, vector<8x8xf32>
    %c8 = arith.constant 8 : index
    %c0_5 = arith.constant 0 : index
    %5 = vector.load %arg1[%c8, %c0_5] : memref<24x8xf32, #tpu.memory_space<vmem>>, vector<8x8xf32>
    %6 = arith.subf %4, %5 : vector<8x8xf32>
    %cst = arith.constant -2.000000e+00 : f32
    %7 = vector.broadcast %cst : f32 to vector<8x8xf32>
    %8 = arith.mulf %7, %6 : vector<8x8xf32>
    %cst_6 = arith.constant 0.000000e+00 : f32
    %9 = vector.broadcast %cst_6 : f32 to vector<8x8xf32>
    %10 = arith.maximumf %8, %9 : vector<8x8xf32>
    %11 = math.absf %8 : vector<8x8xf32>
    %cst_7 = arith.constant 0.000000e+00 : f32
    %12 = vector.broadcast %cst_7 : f32 to vector<8x8xf32>
    %13 = arith.subf %12, %11 : vector<8x8xf32>
    %14 = math.exp %13 : vector<8x8xf32>
    %cst_8 = arith.constant 1.000000e+00 : f32
    %15 = vector.broadcast %cst_8 : f32 to vector<8x8xf32>
    %16 = arith.addf %15, %14 : vector<8x8xf32>
    %17 = math.log %16 : vector<8x8xf32>
    %18 = arith.addf %10, %17 : vector<8x8xf32>
    %19 = arith.addf %6, %18 : vector<8x8xf32>
    %cst_9 = arith.constant 0.693147182 : f32
    %20 = vector.broadcast %cst_9 : f32 to vector<8x8xf32>
    %21 = arith.subf %19, %20 : vector<8x8xf32>
    %22 = tpu.iota {dimensions = array<i32: 0>} : vector<8x8xi32>
    %c0_i32 = arith.constant 0 : i32
    %23 = vector.broadcast %c0_i32 : i32 to vector<8x8xi32>
    %24 = arith.cmpi eq, %22, %23 : vector<8x8xi32>
    %25 = vector.broadcast %0 : vector<1x8xf32> to vector<8x8xf32>
    %26 = arith.mulf %21, %25 : vector<8x8xf32>
    %27 = arith.select %24, %26, %21 : vector<8x8xi1>, vector<8x8xf32>
    %cst_10 = arith.constant dense<0.000000e+00> : vector<8xf32>
    %28 = vector.multi_reduction <add>, %27, %cst_10 [1] : vector<8x8xf32> to vector<8xf32>
    %29 = vector.shape_cast %28 : vector<8xf32> to vector<8x1xf32>
    %cst_11 = arith.constant 8.000000e+00 : f32
    %30 = vector.broadcast %cst_11 : f32 to vector<8x1xf32>
    %31 = arith.divf %29, %30 : vector<8x1xf32>
    %32 = vector.extract_strided_slice %31 {offsets = [0, 0], sizes = [1, 1], strides = [1, 1]} : vector<8x1xf32> to vector<1x1xf32>
    %33 = vector.extract_strided_slice %31 {offsets = [1, 0], sizes = [1, 1], strides = [1, 1]} : vector<8x1xf32> to vector<1x1xf32>
    %34 = vector.extract_strided_slice %31 {offsets = [2, 0], sizes = [1, 1], strides = [1, 1]} : vector<8x1xf32> to vector<1x1xf32>
    %35 = arith.subf %33, %34 : vector<1x1xf32>
    %cst_12 = arith.constant 1.000000e-01 : f32
    %36 = vector.broadcast %cst_12 : f32 to vector<1x1xf32>
    %37 = arith.addf %35, %36 : vector<1x1xf32>
    %cst_13 = arith.constant 0.000000e+00 : f32
    %38 = vector.broadcast %cst_13 : f32 to vector<1x1xf32>
    %39 = arith.maximumf %37, %38 : vector<1x1xf32>
    %40 = vector.extract_strided_slice %31 {offsets = [3, 0], sizes = [1, 1], strides = [1, 1]} : vector<8x1xf32> to vector<1x1xf32>
    %41 = vector.extract_strided_slice %31 {offsets = [4, 0], sizes = [1, 1], strides = [1, 1]} : vector<8x1xf32> to vector<1x1xf32>
    %42 = vector.extract_strided_slice %31 {offsets = [5, 0], sizes = [1, 1], strides = [1, 1]} : vector<8x1xf32> to vector<1x1xf32>
    %c0_14 = arith.constant 0 : index
    %c0_15 = arith.constant 0 : index
    %43 = vector.load %arg3[%c0_14, %c0_15] : memref<4x8xf32, #tpu.memory_space<vmem>>, vector<4x8xf32>
    %cst_16 = arith.constant dense<0xFF800000> : vector<8xf32>
    %44 = vector.multi_reduction <maximumf>, %43, %cst_16 [0] : vector<4x8xf32> to vector<8xf32>
    %45 = vector.shape_cast %44 : vector<8xf32> to vector<1x8xf32>
    %46 = vector.broadcast %45 : vector<1x8xf32> to vector<4x8xf32>
    %47 = arith.subf %43, %46 : vector<4x8xf32>
    %48 = math.exp %47 : vector<4x8xf32>
    %cst_17 = arith.constant dense<0.000000e+00> : vector<8xf32>
    %49 = vector.multi_reduction <add>, %48, %cst_17 [0] : vector<4x8xf32> to vector<8xf32>
    %50 = vector.shape_cast %49 : vector<8xf32> to vector<1x8xf32>
    %51 = math.log %50 : vector<1x8xf32>
    %52 = arith.addf %45, %51 : vector<1x8xf32>
    %53 = arith.fptosi %3 : vector<1x8xf32> to vector<1x8xi32>
    %54 = tpu.iota {dimensions = array<i32: 0>} : vector<4x8xi32>
    %55 = vector.broadcast %53 : vector<1x8xi32> to vector<4x8xi32>
    %56 = arith.cmpi eq, %54, %55 : vector<4x8xi32>
    %57 = arith.extui %56 : vector<4x8xi1> to vector<4x8xi32>
    %58 = arith.sitofp %57 : vector<4x8xi32> to vector<4x8xf32>
    %59 = arith.mulf %43, %58 : vector<4x8xf32>
    %cst_18 = arith.constant dense<0.000000e+00> : vector<8xf32>
    %60 = vector.multi_reduction <add>, %59, %cst_18 [0] : vector<4x8xf32> to vector<8xf32>
    %61 = vector.shape_cast %60 : vector<8xf32> to vector<1x8xf32>
    %62 = arith.subf %52, %61 : vector<1x8xf32>
    %63 = vector.shape_cast %62 : vector<1x8xf32> to vector<1x1x8xf32>
    %cst_19 = arith.constant dense<0.000000e+00> : vector<1xf32>
    %64 = vector.multi_reduction <add>, %63, %cst_19 [1, 2] : vector<1x1x8xf32> to vector<1xf32>
    %65 = vector.shape_cast %64 : vector<1xf32> to vector<1x1x1xf32>
    %66 = vector.extract %65[0, 0, 0] : f32 from vector<1x1x1xf32>
    %cst_20 = arith.constant 8.000000e+00 : f32
    %67 = arith.divf %66, %cst_20 : f32
    %68 = vector.extract_strided_slice %6 {offsets = [0, 0], sizes = [1, 8], strides = [1, 1]} : vector<8x8xf32> to vector<1x8xf32>
    %c0_21 = arith.constant 0 : index
    %c0_22 = arith.constant 0 : index
    %69 = vector.load %arg2[%c0_21, %c0_22] : memref<8x4xf32, #tpu.memory_space<vmem>>, vector<8x1xf32>
    %c0_23 = arith.constant 0 : index
    %c1 = arith.constant 1 : index
    %70 = vector.load %arg2[%c0_23, %c1] : memref<8x4xf32, #tpu.memory_space<vmem>>, vector<8x1xf32>
    %71 = arith.subf %69, %70 : vector<8x1xf32>
    %c0_24 = arith.constant 0 : index
    %c2 = arith.constant 2 : index
    %72 = vector.load %arg2[%c0_24, %c2] : memref<8x4xf32, #tpu.memory_space<vmem>>, vector<8x1xf32>
    %73 = arith.mulf %71, %72 : vector<8x1xf32>
    %74 = arith.mulf %68, %1 : vector<1x8xf32>
    %75 = vector.broadcast %73 : vector<8x1xf32> to vector<8x8xf32>
    %76 = vector.broadcast %74 : vector<1x8xf32> to vector<8x8xf32>
    %77 = arith.subf %75, %76 : vector<8x8xf32>
    %78 = math.absf %77 : vector<8x8xf32>
    %cst_25 = arith.constant 2.000000e-01 : f32
    %79 = vector.broadcast %cst_25 : f32 to vector<8x8xf32>
    %80 = arith.subf %78, %79 : vector<8x8xf32>
    %cst_26 = arith.constant 0.000000e+00 : f32
    %81 = vector.broadcast %cst_26 : f32 to vector<8x8xf32>
    %82 = arith.maximumf %80, %81 : vector<8x8xf32>
    %83 = vector.shape_cast %82 : vector<8x8xf32> to vector<1x8x8xf32>
    %cst_27 = arith.constant dense<0.000000e+00> : vector<1xf32>
    %84 = vector.multi_reduction <add>, %83, %cst_27 [1, 2] : vector<1x8x8xf32> to vector<1xf32>
    %85 = vector.shape_cast %84 : vector<1xf32> to vector<1x1x1xf32>
    %86 = vector.extract %85[0, 0, 0] : f32 from vector<1x1x1xf32>
    %cst_28 = arith.constant 7.812500e-03 : f32
    %87 = arith.mulf %86, %cst_28 : f32
    %c0_29 = arith.constant 0 : index
    %88 = memref.load %arg0[%c0_29] : memref<1xi32, #tpu.memory_space<smem>>
    %89 = tpu.iota {dimensions = array<i32: 1>} : vector<1x8xi32>
    %90 = vector.broadcast %88 : i32 to vector<1x8xi32>
    %91 = arith.cmpi slt, %89, %90 : vector<1x8xi32>
    %92 = arith.extui %91 : vector<1x8xi1> to vector<1x8xi32>
    %93 = arith.sitofp %92 : vector<1x8xi32> to vector<1x8xf32>
    %cst_30 = arith.constant 9.99999997E-7 : f32
    %94 = vector.broadcast %cst_30 : f32 to vector<1x8xf32>
    %95 = arith.maximumf %2, %94 : vector<1x8xf32>
    %96 = math.log %95 : vector<1x8xf32>
    %97 = arith.mulf %68, %68 : vector<1x8xf32>
    %98 = arith.divf %97, %95 : vector<1x8xf32>
    %99 = arith.addf %96, %98 : vector<1x8xf32>
    %cst_31 = arith.constant 5.000000e-01 : f32
    %100 = vector.broadcast %cst_31 : f32 to vector<1x8xf32>
    %101 = arith.mulf %100, %99 : vector<1x8xf32>
    %102 = arith.sitofp %88 : i32 to f32
    %cst_32 = arith.constant 1.000000e+00 : f32
    %103 = arith.maximumf %102, %cst_32 : f32
    %104 = arith.mulf %101, %93 : vector<1x8xf32>
    %105 = vector.shape_cast %104 : vector<1x8xf32> to vector<1x1x8xf32>
    %cst_33 = arith.constant dense<0.000000e+00> : vector<1xf32>
    %106 = vector.multi_reduction <add>, %105, %cst_33 [1, 2] : vector<1x1x8xf32> to vector<1xf32>
    %107 = vector.shape_cast %106 : vector<1xf32> to vector<1x1x1xf32>
    %108 = vector.extract %107[0, 0, 0] : f32 from vector<1x1x1xf32>
    %109 = arith.divf %108, %103 : f32
    %cst_34 = arith.constant 1.000000e+00 : f32
    %110 = vector.broadcast %cst_34 : f32 to vector<1x1xf32>
    %111 = arith.mulf %110, %32 : vector<1x1xf32>
    %cst_35 = arith.constant 5.000000e-01 : f32
    %112 = arith.mulf %cst_35, %67 : f32
    %113 = vector.broadcast %112 : f32 to vector<1x1xf32>
    %114 = arith.addf %111, %113 : vector<1x1xf32>
    %cst_36 = arith.constant 3.000000e-01 : f32
    %115 = vector.broadcast %cst_36 : f32 to vector<1x1xf32>
    %116 = arith.mulf %115, %39 : vector<1x1xf32>
    %117 = arith.addf %114, %116 : vector<1x1xf32>
    %cst_37 = arith.constant 5.000000e-02 : f32
    %118 = vector.broadcast %cst_37 : f32 to vector<1x1xf32>
    %119 = arith.mulf %118, %40 : vector<1x1xf32>
    %120 = arith.addf %117, %119 : vector<1x1xf32>
    %cst_38 = arith.constant 5.000000e-02 : f32
    %121 = vector.broadcast %cst_38 : f32 to vector<1x1xf32>
    %122 = arith.mulf %121, %41 : vector<1x1xf32>
    %123 = arith.addf %120, %122 : vector<1x1xf32>
    %cst_39 = arith.constant 5.000000e-02 : f32
    %124 = vector.broadcast %cst_39 : f32 to vector<1x1xf32>
    %125 = arith.mulf %124, %42 : vector<1x1xf32>
    %126 = arith.addf %123, %125 : vector<1x1xf32>
    %cst_40 = arith.constant 2.000000e-01 : f32
    %127 = arith.mulf %cst_40, %87 : f32
    %128 = vector.broadcast %127 : f32 to vector<1x1xf32>
    %129 = arith.addf %126, %128 : vector<1x1xf32>
    %cst_41 = arith.constant 1.000000e-01 : f32
    %130 = arith.mulf %cst_41, %109 : f32
    %131 = vector.broadcast %130 : f32 to vector<1x1xf32>
    %132 = arith.addf %129, %131 : vector<1x1xf32>
    %133 = tpu.iota {dimensions = array<i32: 1>} : vector<1x128xi32>
    %c0_i32_42 = arith.constant 0 : i32
    %134 = vector.broadcast %c0_i32_42 : i32 to vector<1x128xi32>
    %135 = arith.cmpi eq, %133, %134 : vector<1x128xi32>
    %cst_43 = arith.constant 0.000000e+00 : f32
    %136 = vector.shape_cast %132 : vector<1x1xf32> to vector<1x1xf32>
    %137 = vector.broadcast %136 : vector<1x1xf32> to vector<1x128xf32>
    %138 = vector.broadcast %cst_43 : f32 to vector<1x128xf32>
    %139 = arith.select %135, %137, %138 : vector<1x128xi1>, vector<1x128xf32>
    %c1_i32 = arith.constant 1 : i32
    %140 = vector.broadcast %c1_i32 : i32 to vector<1x128xi32>
    %141 = arith.cmpi eq, %133, %140 : vector<1x128xi32>
    %cst_44 = arith.constant 0.000000e+00 : f32
    %142 = vector.shape_cast %32 : vector<1x1xf32> to vector<1x1xf32>
    %143 = vector.broadcast %142 : vector<1x1xf32> to vector<1x128xf32>
    %144 = vector.broadcast %cst_44 : f32 to vector<1x128xf32>
    %145 = arith.select %141, %143, %144 : vector<1x128xi1>, vector<1x128xf32>
    %c2_i32 = arith.constant 2 : i32
    %146 = vector.broadcast %c2_i32 : i32 to vector<1x128xi32>
    %147 = arith.cmpi eq, %133, %146 : vector<1x128xi32>
    %cst_45 = arith.constant 0.000000e+00 : f32
    %148 = vector.broadcast %67 : f32 to vector<1x128xf32>
    %149 = vector.broadcast %cst_45 : f32 to vector<1x128xf32>
    %150 = arith.select %147, %148, %149 : vector<1x128xi1>, vector<1x128xf32>
    %c3_i32 = arith.constant 3 : i32
    %151 = vector.broadcast %c3_i32 : i32 to vector<1x128xi32>
    %152 = arith.cmpi eq, %133, %151 : vector<1x128xi32>
    %cst_46 = arith.constant 0.000000e+00 : f32
    %153 = vector.shape_cast %39 : vector<1x1xf32> to vector<1x1xf32>
    %154 = vector.broadcast %153 : vector<1x1xf32> to vector<1x128xf32>
    %155 = vector.broadcast %cst_46 : f32 to vector<1x128xf32>
    %156 = arith.select %152, %154, %155 : vector<1x128xi1>, vector<1x128xf32>
    %c4_i32 = arith.constant 4 : i32
    %157 = vector.broadcast %c4_i32 : i32 to vector<1x128xi32>
    %158 = arith.cmpi eq, %133, %157 : vector<1x128xi32>
    %cst_47 = arith.constant 0.000000e+00 : f32
    %159 = vector.shape_cast %40 : vector<1x1xf32> to vector<1x1xf32>
    %160 = vector.broadcast %159 : vector<1x1xf32> to vector<1x128xf32>
    %161 = vector.broadcast %cst_47 : f32 to vector<1x128xf32>
    %162 = arith.select %158, %160, %161 : vector<1x128xi1>, vector<1x128xf32>
    %c5_i32 = arith.constant 5 : i32
    %163 = vector.broadcast %c5_i32 : i32 to vector<1x128xi32>
    %164 = arith.cmpi eq, %133, %163 : vector<1x128xi32>
    %cst_48 = arith.constant 0.000000e+00 : f32
    %165 = vector.shape_cast %41 : vector<1x1xf32> to vector<1x1xf32>
    %166 = vector.broadcast %165 : vector<1x1xf32> to vector<1x128xf32>
    %167 = vector.broadcast %cst_48 : f32 to vector<1x128xf32>
    %168 = arith.select %164, %166, %167 : vector<1x128xi1>, vector<1x128xf32>
    %c6_i32 = arith.constant 6 : i32
    %169 = vector.broadcast %c6_i32 : i32 to vector<1x128xi32>
    %170 = arith.cmpi eq, %133, %169 : vector<1x128xi32>
    %cst_49 = arith.constant 0.000000e+00 : f32
    %171 = vector.shape_cast %42 : vector<1x1xf32> to vector<1x1xf32>
    %172 = vector.broadcast %171 : vector<1x1xf32> to vector<1x128xf32>
    %173 = vector.broadcast %cst_49 : f32 to vector<1x128xf32>
    %174 = arith.select %170, %172, %173 : vector<1x128xi1>, vector<1x128xf32>
    %c7_i32 = arith.constant 7 : i32
    %175 = vector.broadcast %c7_i32 : i32 to vector<1x128xi32>
    %176 = arith.cmpi eq, %133, %175 : vector<1x128xi32>
    %cst_50 = arith.constant 0.000000e+00 : f32
    %177 = vector.broadcast %87 : f32 to vector<1x128xf32>
    %178 = vector.broadcast %cst_50 : f32 to vector<1x128xf32>
    %179 = arith.select %176, %177, %178 : vector<1x128xi1>, vector<1x128xf32>
    %c8_i32 = arith.constant 8 : i32
    %180 = vector.broadcast %c8_i32 : i32 to vector<1x128xi32>
    %181 = arith.cmpi eq, %133, %180 : vector<1x128xi32>
    %cst_51 = arith.constant 0.000000e+00 : f32
    %182 = vector.broadcast %109 : f32 to vector<1x128xf32>
    %183 = vector.broadcast %cst_51 : f32 to vector<1x128xf32>
    %184 = arith.select %181, %182, %183 : vector<1x128xi1>, vector<1x128xf32>
    %185 = arith.addf %139, %145 : vector<1x128xf32>
    %186 = arith.addf %150, %156 : vector<1x128xf32>
    %187 = arith.addf %162, %168 : vector<1x128xf32>
    %188 = arith.addf %174, %179 : vector<1x128xf32>
    %189 = arith.addf %185, %186 : vector<1x128xf32>
    %190 = arith.addf %187, %188 : vector<1x128xf32>
    %191 = arith.addf %189, %190 : vector<1x128xf32>
    %192 = arith.addf %191, %184 : vector<1x128xf32>
    %c0_52 = arith.constant 0 : index
    %c0_53 = arith.constant 0 : index
    %193 = vector.load %arg4[%c0_52, %c0_53] : memref<1x128xf32, #tpu.memory_space<vmem>>, vector<1x128xf32>
    tpu.vector_store %arg4[%c0_52, %c0_53], %192 {strides = array<i32>} : memref<1x128xf32, #tpu.memory_space<vmem>>, vector<1x128xf32>,
    return
  }
}

</mosaic_0001>

<bundles_post_ra>
// kernel: tpu_custom_call.1
= control target key start
LH: loop header
LB: loop body
LE: loop exit
PB: predicated region body
PF: predicated region fallthrough
CT: control target
= control target key end

     0   :  { %s331_s17 = smov 127   ;;  %v332_v1 = vmov 0   ;;  %s454_s0 = inlined_call_operand.<no memory space> [shape: s32[1], index: 0, kind: input, shape index: {}]   ;;  %s455_s1 = inlined_call_operand.vmem [shape: f32[24,8], index: 1, kind: input, shape index: {}]   ;;  %s456_s2 = inlined_call_operand.vmem [shape: f32[8,4], index: 2, kind: input, shape index: {}]   ;;  %s457_s3 = inlined_call_operand.vmem [shape: f32[4,8], index: 3, kind: input, shape index: {}]   ;;  %s458_s4 = inlined_call_operand.hbm [shape: f32[1,128], index: 4, kind: output, shape index: {}]  }
   0x1   :  { %v112_v0 = vld [vmem:[%s456_s2] sm:$0xff]  ;;  %291 = vset.pattern.permute.xlu1 %v332_v1  ;;  %292 = vset.pattern.permute.xlu0 %v332_v1 }
   0x2   :  { %114 = vrot.lane.b32.xlu0 %v112_v0, %s331_s17 }
   0x3   :  { %10 = vsyncpa [#allocation4], 0  ;;  %s333_s18 = smov 126   ;;  %v59_v2 = vld [vmem:[%s457_s3] sm:$0xf]  ;;  %vm60_vm0 = vcmask 60416   ;;  %v38_v17 = vlaneseq  ;;  %s162_s11 = scvt.s32.f32 %s454_s0 }
   0x4   :  { %v61_v3 = vsel %vm60_vm0, %v59_v2, -inf  ;;  %v23_v11 = vld [vmem:[%s455_s1] sm:$0xff]  ;;  %v24_v12 = vld [vmem:[%s455_s1 + $0x8] sm:$0xff]  ;;  %v22_v19 = vld [vmem:[%s455_s1 + $0x13] sm:$0x1]  ;;  %v334_v33 = vmov 0.0  }
   0x5   :  { %v62_v4 = vrot.slane %v61_v3, 4  ;;  %v375_v14 = vsub.f32 %v23_v11, %v24_v12  ;;  %v382_v21 = vshrl.u32 %v38_v17, 7  ;;  %v275_v22 = vtrunc.f32 %v22_v19  ;;  %v271_v59 = vld [vmem:[%s455_s1 + $0x10] ss:$0 sm:$0xff]  ;;  %v21_v1 = vld [vmem:[%s455_s1 + $0x12] sm:$0x1] }
   0x6   :  { %118 = vrot.lane.b32.xlu0 %v112_v0, %s333_s18  ;;  %vm98_vm2 = vcmask 57344   ;;  %vm47_vm4 = vcmask 64512   ;;  %v150_v12 = vstv %s454_s0  ;;  %s335_s12 = smov 1.0   ;;  %s336_s20 = smov [#allocation3]  }
   0x7   :  { %v63_v5 = vmax.f32 %v61_v3, %v62_v4  ;;  %v26_v15 = vmul.f32 -2.0, %v375_v14  ;;  %v276_v26 = vcvt.f32.s32 %v275_v22  ;;  %v84_v27 = vsub.s32 0, %v382_v21  ;;  %v20_v3 = vld [vmem:[%s455_s1 + $0x11] sm:$0x1]  ;;  %s163_s13 = smax.f32 %s335_s12, %s162_s11  ;;  %s262_s2 = sshll.u32 %s336_s20, 4  ;;  %s263_s2 = int_to_ptr.vmem [resolvable:$true] %s262_s2 }
   0x8   :  { %vm40_vm3 = vcmp.eq.s32.totalorder %v382_v21, 0  ;;  %s307_s21 = scalar_lea.vmem %s263_s2, 16  ;;  %s311_s22 = scalar_lea.vmem %s263_s2, 32 }
   0x9   :  { %v64_v6 = vrot.slane %v63_v5, 2  ;;  %v28_v16 = vand.u32 2147483647, %v26_v15  ;;  %v85_v29 = vrot.slane %v276_v26, %v84_v27  ;;  %v27_v48 = vmax.f32 %v26_v15, 0.0  ;;  %p308_p0 = scmp.ne.s32.totalorder %s263_s2, %s307_s21  ;;  %p312_p1 = scmp.lt.s32.totalorder %s263_s2, %s263_s2 }
   0xa   :  { %p313_p2 = scmp.lt.s32.totalorder %s311_s22, %s307_s21 }
   0xb   :  { %v65_v7 = vmax.f32 %v63_v5, %v64_v6  ;;  %v29_v18 = vsub.f32 0.0, %v28_v16  ;;  %vm86_vm1 = vcmp.eq.s32.totalorder %v382_v21, %v85_v29  ;;  %v157_v5 = vmul.f32 %v375_v14, %v375_v14 }
   0xc   :  { %v272_v34 = vsel %vm86_vm1, 1.0, %v334_v33  ;;  %p314_p3 = por %p313_p2, %p312_p1 }
   0xd   :  { %v66_v8 = vrot.slane %v65_v7, 1  ;;  %v30_v23 = vmul.f32 1.442695, %v29_v18  ;;  %v89_v40 = vmul.f32 %v272_v34, %v59_v2 }
   0xe   :  { %p315_p4 = pnand %p314_p3, %p308_p0 }
   0xf   :  { %v67_v9 = vmax.f32 %v65_v7, %v66_v8  ;;  %v90_v42 = vsel %vm60_vm0, %v89_v40, 0.0  ;;  %v122_v7 = vmul.f32 %v375_v14, %v20_v3 }
  0x10   :  { %v91_v44 = vrot.slane %v90_v42, 4 }
  0x11   :  { %v68_v10 = vsub.f32 %v59_v2, %v67_v9  ;;  %v154_v2 = vmax.f32 %v21_v1, 1e-06  ;;  %v131_v11 = vrot.slane %v122_v7, %v84_v27 }
  0x12   :  { %v92_v45 = vadd.f32 %v91_v44, %v90_v42 }
  0x13   :  { %v69_v13 = vmul.f32 1.442695, %v68_v10  ;;  %v405_v10 = vand.u32 127, %v38_v17 }
  0x14   :  { %v93_v47 = vrot.slane %v92_v45, 2 }
  0x15   :  { %293 = vpow2.f32 %v69_v13  ;;  %vm151_vm5 = vcmp.lt.s32.totalorder %v405_v10, %v150_v12  ;;  %vm225_vm6 = vcmp.eq.s32.totalorder %v405_v10, 5  ;;  %vm227_vm7 = vcmp.eq.s32.totalorder %v405_v10, 6 }
  0x16   :  { %295 = vpow2.f32 %v30_v23  ;;  %v94_v50 = vadd.f32 %v93_v47, %v92_v45  ;;  %vm229_vm8 = vcmp.eq.s32.totalorder %v405_v10, 7  ;;  %vm223_vm9 = vcmp.eq.s32.totalorder %v405_v10, 4 }
  0x17   :  { %vm213_vm10 = vcmp.eq.s32.totalorder %v405_v10, 2  ;;  %vm216_vm11 = vcmp.eq.s32.totalorder %v405_v10, 3  ;;  %vm204_vm12 = vcmp.eq.s32.totalorder %v405_v10, 0  ;;  %vm211_vm13 = vcmp.eq.s32.totalorder %v405_v10, 1 }
  0x18   :  { %v95_v54 = vrot.slane %v94_v50, 1  ;;  %vm232_vm14 = vcmp.eq.s32.totalorder %v405_v10, 8 }
  0x1a   :  { %v96_v57 = vadd.f32 %v95_v54, %v94_v50 }
  0x1f   :  { %v294_v20 = vpop.eup %293 }
  0x20   :  { %v71_v24 = vsel %vm60_vm0, %v294_v20, 0.0  ;;  %v296_v32 = vpop.eup %295  ;;  %v274_v20 = vsel %vm151_vm5, 1.0, %v334_v33 }
  0x21   :  { %v72_v25 = vrot.slane %v71_v24, 4  ;;  %v32_v38 = vadd.f32 1.0, %v296_v32 }
  0x23   :  { %v73_v28 = vadd.f32 %v72_v25, %v71_v24  ;;  %297 = vlog2.f32 %v32_v38 }
  0x25   :  { %v74_v30 = vrot.slane %v73_v28, 2 }
  0x27   :  { %v75_v36 = vadd.f32 %v74_v30, %v73_v28 }
  0x29   :  { %v76_v41 = vrot.slane %v75_v36, 1 }
  0x2b   :  { %v77_v43 = vadd.f32 %v76_v41, %v75_v36 }
  0x2d   :  { %299 = vlog2.f32 %v77_v43  ;;  %v298_v46 = vpop.eup %297 }
  0x2e   :  { %v34_v49 = vmul.f32 0.6931472, %v298_v46  ;;  %301 = vlog2.f32 %v154_v2 }
  0x2f   :  { %303 = vrcp.f32 %v154_v2 }
  0x30   :  { %v35_v52 = vadd.f32 %v34_v49, %v27_v48 }
  0x32   :  { %v36_v55 = vadd.f32 %v35_v52, %v375_v14 }
  0x34   :  { %v270_v58 = vadd.f32 -0.6931472, %v36_v55 }
  0x36   :  { %v45_v61 = vmul.f32 %v271_v59, %v270_v58 }
  0x37   :  { %v300_v51 = vpop.eup %299 }
  0x38   :  { %v79_v53 = vmul.f32 0.6931472, %v300_v51  ;;  %v46_v63 = vsel %vm40_vm3, %v45_v61, %v270_v58  ;;  %v302_v4 = vpop.eup %301  ;;  %v175_v51 = vstv %s163_s13 }
  0x39   :  { %v304_v6 = vpop.eup %303  ;;  %v156_v8 = vmul.f32 0.6931472, %v302_v4  ;;  %305 = vrcp.f32 %v175_v51 }
  0x3a   :  { %v80_v56 = vadd.f32 %v79_v53, %v67_v9  ;;  %v159_v9 = vmul.f32 %v304_v6, %v157_v5 }
  0x3c   :  { %v97_v60 = vsub.f32 %v80_v56, %v96_v57  ;;  %v160_v13 = vadd.f32 %v159_v9, %v156_v8 }
  0x3e   :  { %v99_v62 = vsel %vm98_vm2, %v97_v60, 0.0  ;;  %v161_v19 = vmul.f32 0.5, %v160_v13 }
  0x40   :  { %v164_v22 = vmul.f32 %v274_v20, %v161_v19 }
  0x42   :  { %v165_v17 = vsel %vm98_vm2, %v164_v22, 0.0 }
  0x74   :  { %v115_v31 = vpop.permute.xlu0 %114 }
  0x75   :  { %v117_v35 = vsub.f32 %v112_v0, %v115_v31  ;;  %v48_v0 = vsel %vm47_vm4, %v46_v63, 0.0  ;;  %v306_v63 = vpop.eup %305 }
  0x78   :  { %v119_v37 = vpop.permute.xlu0 %118 }
  0x79   :  { %v121_v39 = vmul.f32 %v119_v37, %v117_v35 }
  0x7b   :  { %125 = vperm.xlu1 %291, %v121_v39  }
  0x9f   :  { %100 = vadd.xlane.f32.xlu1 %v99_v62 }
  0xa3   :  { %49 = vadd.xlane.f32.xlu1 %v48_v0 }
  0xfa   :  { %v126_v15 = vpop.permute.xlu1 %125 }
  0xfb   :  { %v132_v16 = vsub.f32 %v126_v15, %v131_v11 }
  0xfd   :  { %v133_v18 = vand.u32 2147483647, %v132_v16 }
  0xff   :  { %v273_v21 = vadd.f32 -0.2, %v133_v18 }
 0x101   :  { %v135_v14 = vmax.f32 %v273_v21, 0.0 }
 0x103   :  { %v136_v23 = vsel %vm47_vm4, %v135_v14, 0.0 }
 0x104   :  { %137 = vadd.xlane.f32.xlu0 %v136_v23 }
 0x108   :  { %166 = vadd.xlane.f32.xlu0 %v165_v17 }
 0x12c   :  { %v101_v24 = vpop.xlane.xlu1 %100 }
 0x12d   :  { %v102_v25 = vrot.slane %v101_v24, 4 }
 0x12f   :  { %v103_v26 = vadd.f32 %v102_v25, %v101_v24 }
 0x130   :  { %v50_v27 = vpop.xlane.xlu1 %49 }
 0x131   :  { %v104_v28 = vrot.slane %v103_v26, 2  ;;  %v413_v29 = vmul.f32 0.125, %v50_v27 }
 0x133   :  { %v54_v30 = vrot.slane %v413_v29, 1  ;;  %v105_v31 = vadd.f32 %v104_v28, %v103_v26  ;;  %v187_v38 = vmul.f32 0.05, %v413_v29  ;;  %v226_v1 = vsel %vm225_vm6, %v413_v29, 0.0 }
 0x134   :  { %v238_v3 = vrot.slane %v226_v1, 1  ;;  %v228_v4 = vsel %vm227_vm7, %v413_v29, 0.0  ;;  %v224_v6 = vsel %vm223_vm9, %v413_v29, 0.0  ;;  %v212_v23 = vsel %vm211_vm13, %v413_v29, 0.0 }
 0x135   :  { %v56_v32 = vsub.f32 %v413_v29, %v54_v30  ;;  %v106_v33 = vrot.slane %v105_v31, 1  ;;  %v189_v42 = vrot.slane %v187_v38, 3  ;;  %v192_v44 = vrot.slane %v187_v38, 4 }
 0x136   :  { %v195_v46 = vrot.slane %v187_v38, 5  ;;  %v240_v11 = vadd.f32 %v238_v3, %v224_v6 }
 0x137   :  { %v57_v34 = vadd.f32 0.1, %v56_v32  ;;  %v107_v35 = vadd.f32 %v106_v33, %v105_v31 }
 0x139   :  { %v58_v36 = vmax.f32 %v57_v34, 0.0  ;;  %277 = vpush %v107_v35 }
 0x13b   :  { %219 = vperm.xlu0 %292, %v58_v36   ;;  %v182_v37 = vmul.f32 0.3, %v58_v36 }
 0x13d   :  { %v184_v39 = vrot.slane %v182_v37, 1 }
 0x16a   :  { %s417_s1 = spop %277 }
 0x16b   :  { %s111_s7 = smul.f32 0.125, %s417_s1 }
 0x16d   :  { %s179_s8 = smul.f32 0.5, %s111_s7  ;;  %v214_v18 = vstv %s111_s7 }
 0x16e   :  { %v215_v20 = vsel %vm213_vm10, %v214_v18, 0.0 }
 0x16f   :  { %v180_v40 = vstv %s179_s8 }
 0x170   :  { %v181_v41 = vadd.f32 %v180_v40, %v413_v29 }
 0x172   :  { %v186_v43 = vadd.f32 %v184_v39, %v181_v41 }
 0x174   :  { %v191_v45 = vadd.f32 %v189_v42, %v186_v43 }
 0x176   :  { %v194_v47 = vadd.f32 %v192_v44, %v191_v45 }
 0x178   :  { %v197_v48 = vadd.f32 %v195_v46, %v194_v47 }
 0x191   :  { %v138_v49 = vpop.xlane.xlu0 %137 }
 0x192   :  { %v139_v50 = vrot.slane %v138_v49, 4 }
 0x194   :  { %v140_v52 = vadd.f32 %v139_v50, %v138_v49 }
 0x195   :  { %v167_v53 = vpop.xlane.xlu0 %166 }
 0x196   :  { %v141_v54 = vrot.slane %v140_v52, 2  ;;  %v168_v55 = vrot.slane %v167_v53, 4 }
 0x198   :  { %v169_v56 = vadd.f32 %v168_v55, %v167_v53  ;;  %v142_v57 = vadd.f32 %v141_v54, %v140_v52 }
 0x19a   :  { %v170_v58 = vrot.slane %v169_v56, 2  ;;  %v143_v59 = vrot.slane %v142_v57, 1 }
 0x19c   :  { %v144_v60 = vadd.f32 %v143_v59, %v142_v57  ;;  %v171_v61 = vadd.f32 %v170_v58, %v169_v56 }
 0x19e   :  { %279 = vpush %v144_v60  ;;  %v172_v62 = vrot.slane %v171_v61, 1 }
 0x1a0   :  { %v173_v0 = vadd.f32 %v172_v62, %v171_v61 }
 0x1a2   :  { %281 = vpush %v173_v0 }
 0x1a3   :  { %283 = vpush %v306_v63 }
 0x1ba   :  { %v220_v19 = vpop.permute.xlu0 %219 }
 0x1bb   :  { %v222_v21 = vsel %vm216_vm11, %v220_v19, 0.0 }
 0x1bc   :  { %v236_v14 = vadd.f32 %v222_v21, %v215_v20 }
 0x1be   :  { %v243_v24 = vrot.slane %v236_v14, 1 }
 0x1cf   :  { %s280_s0 = spop %279 }
 0x1d0   :  { %s146_s14 = smul.f32 0.0078125, %s280_s0 }
 0x1d2   :  { %s198_s15 = smul.f32 0.2, %s146_s14  ;;  %v230_v2 = vstv %s146_s14 }
 0x1d3   :  { %v231_v5 = vsel %vm229_vm8, %v230_v2, 0.0  ;;  %s282_s16 = spop %281 }
 0x1d4   :  { %v241_v7 = vadd.f32 %v231_v5, %v228_v4  ;;  %s284_s17 = spop %283  ;;  %v199_v8 = vstv %s198_s15 }
 0x1d5   :  { %s178_s18 = smul.f32 %s284_s17, %s282_s16  ;;  %v200_v12 = vadd.f32 %v199_v8, %v197_v48 }
 0x1d6   :  { %v247_v9 = vrot.slane %v241_v7, 2 }
 0x1d7   :  { %s201_s19 = smul.f32 0.1, %s178_s18  ;;  %v233_v26 = vstv %s178_s18 }
 0x1d8   :  { %v249_v13 = vadd.f32 %v247_v9, %v240_v11  ;;  %v234_v31 = vsel %vm232_vm14, %v233_v26, 0.0 }
 0x1d9   :  { %v202_v15 = vstv %s201_s19 }
 0x1da   :  { %v203_v16 = vadd.f32 %v202_v15, %v200_v12  ;;  %v251_v28 = vrot.slane %v249_v13, 3 }
 0x1dc   :  { %207 = vperm.xlu1 %291, %v203_v16  }
 0x25b   :  { %v208_v22 = vpop.permute.xlu1 %207 }
 0x25c   :  { %v210_v17 = vsel %vm204_vm12, %v208_v22, 0.0 }
 0x25d   :  { %v235_v25 = vadd.f32 %v212_v23, %v210_v17 }
 0x25f   :  { %v245_v27 = vadd.f32 %v243_v24, %v235_v25 }
 0x261   :  { %v253_v30 = vadd.f32 %v251_v28, %v245_v27 }
 0x263   :  { %v254_v32 = vadd.f32 %v253_v30, %v234_v31 }
 0x265   :  { %255 = vst [vmem:[#allocation3] sm:$0x1] %v254_v32 }
 0x266   :  { %318 = shalt.err (!%p315_p4)
}
 0x267   :  { %s319_s24 = scalar_lea.hbm %s458_s4, 16 }
 0x268   :  { %p320_p5 = scmp.ne.s32.totalorder %s458_s4, %s319_s24  ;;  %p323_p6 = scmp.lt.u32.totalorder %s319_s24, %s458_s4 }
 0x26a   :  { %p325_p7 = pnand %p323_p6, %p320_p5 }
 0x26c   :  { %328 = shalt.err (!%p325_p7)
}
 0x26d   :  { %265 = dma.vmem_to_hbm [thread:$0]  %s263_s2, 16, %s458_s4, [#allocation4]  }
 0x26e   :  { %329 = dma.done.wait [#allocation4], 16  }
 0x26f   :  { %330 = vsyncadd [#allocation4], 4294967280 }
 0x270   :  { %269 = vsyncpa [#allocation4], 1 }

</bundles_post_ra>
